<compile_context>
chip_gen: v6e
topology: v6e:2x2x1
jax: 0.10.0
libtpu: 0.0.40
codegen_flags: <defaults>
</compile_context>

<pallas_src>
import functools

import jax
import jax.numpy as jnp
from jax.experimental import pallas as pl
from jax.experimental.pallas import tpu as pltpu

FP8_MAX = 448.0   # torch.finfo(torch.float8_e4m3fn).max
FP8_MIN = -448.0  # torch.finfo(torch.float8_e4m3fn).min


def _round_up(x, m):
    return (x + m - 1) // m * m


def _mxu_supports_native_fp8():
    """v7x MXU consumes e4m3 directly; older generations go through bf16."""
    try:
        kind = jax.devices()[0].device_kind.lower()
    except Exception:
        return False
    return ("v7" in kind) or ("7x" in kind)


# ---------------- kernel 1: tiled activation quantization (f32 -> fp8 e4m3) ----------------

def _quantize_kernel(qscale_ref, x_ref, qx_ref):
    q_s = qscale_ref[0]  # 448 / amax (SMEM scalar)
    qx_ref[...] = jnp.clip(
        x_ref[...].astype(jnp.float32) * q_s, FP8_MIN, FP8_MAX
    ).astype(jnp.float8_e4m3fn)


# ---------------- kernel 2: narrow fp8 matmul -> fused scale -> bias ----------------

def _fp8_matmul_kernel(oscale_ref, qx_ref, w_ref, b_ref, o_ref, acc_ref, *, native_fp8):
    k = pl.program_id(2)

    @pl.when(k == 0)
    def _():
        acc_ref[...] = jnp.zeros_like(acc_ref)

    if native_fp8:
        # v7x: e4m3 operands go straight to the MXU -- no cast VALU work at all.
        a = qx_ref[...]
        w = w_ref[...]
    else:
        # v5e/v6e: single direct e4m3->bf16 cast (lossless: e4m3 values are exactly
        # representable in bf16); dequant scales stay factored out of the matmul.
        a = qx_ref[...].astype(jnp.bfloat16)
        w = w_ref[...].astype(jnp.bfloat16)
    acc_ref[...] += jnp.dot(a, w, preferred_element_type=jnp.float32)

    @pl.when(k == pl.num_programs(2) - 1)
    def _():
        o_s = oscale_ref[0]  # x_scale * w_scale (fused dequant scale, SMEM scalar)
        o_ref[...] = (acc_ref[...] * o_s + b_ref[...]).astype(o_ref.dtype)


# ---------------- module wrapper (weight prepared once, like nn.Module params) ----------------

def per_tensor_quantize(t):
    """Plain-JAX replica of the torch helper (used for deterministic weight init)."""
    amax = jnp.max(jnp.abs(t))
    scale = FP8_MAX / jnp.maximum(amax, 1e-12)
    q = jnp.clip(t * scale, FP8_MIN, FP8_MAX).astype(jnp.float8_e4m3fn)
    return q, (1.0 / scale).astype(jnp.float32)


class FP8DynamicLinearTPU:
    """FP8DynamicLinear forward. Weight transpose/pad happens ONCE here, not per call."""

    def __init__(self, qweight, weight_scale, bias, *, tm=256, tn=1024, tk=2048,
                 out_dtype=None):
        N, K = qweight.shape
        self.N, self.K = N, K

        K_pad = _round_up(K, 128)
        N_pad = _round_up(N, 128)
        tk = min(tk, K_pad)
        tn = min(tn, N_pad)
        K_pad = _round_up(K_pad, tk)
        N_pad = _round_up(N_pad, tn)
        self.K_pad, self.N_pad = K_pad, N_pad
        self.tm_default, self.tn, self.tk = tm, tn, tk

        # Static parameter prep: transpose once to [K, N] (MXU-friendly contraction
        # layout, no in-kernel XLU transpose), pad once, keep fp8 in HBM.
        self.w_kn = jnp.pad(qweight.T, ((0, K_pad - K), (0, N_pad - N)))
        if bias is None:
            bias = jnp.zeros((N,), jnp.float32)
        self.b_p = jnp.pad(bias.astype(jnp.float32), (0, N_pad - N)).reshape(1, N_pad)
        self.w_scale = jnp.asarray(weight_scale, jnp.float32).reshape(())
        self.out_dtype = out_dtype
        self.native_fp8 = _mxu_supports_native_fp8()
        # TODO(synk): on v5e, consider pipeline_mode=pl.Buffered(3) on the weight
        # BlockSpec if profiling shows exposed weight-DMA latency at tiny tm.

    def __call__(self, x, *, tm=None):
        B, K = x.shape
        assert K == self.K
        out_dtype = self.out_dtype if self.out_dtype is not None else x.dtype

        # Pad batch to a 32-multiple (8-bit sublane packing for the fp8 qx buffer).
        B_pad = _round_up(B, 32)
        tm = min(tm or self.tm_default, B_pad)
        B_pad = _round_up(B_pad, tm)
        tn, tk = self.tn, self.tk
        # v7x megacore: keep >=2 tiles on the parallel j axis when i has only one.
        if B_pad // tm == 1 and self.N_pad // tn == 1 and tn % 256 == 0:
            tn //= 2

        # ---- per-tensor dynamic quantization scale (XLA fused abs-max reduce) ----
        amax = jnp.maximum(jnp.max(jnp.abs(x)).astype(jnp.float32), 1e-12)
        q_scale = (FP8_MAX / amax).astype(jnp.float32)            # quantize multiplier
        out_scale = ((amax / FP8_MAX) * self.w_scale).astype(jnp.float32)  # x_scale*w_scale

        if B_pad == B and self.K_pad == K:
            x_p = x                                               # skip the extra HBM copy
        else:
            x_p = jnp.pad(x, ((0, B_pad - B), (0, self.K_pad - K)))

        # ---- pre-pass: quantize activations once (fp8 written to HBM) ----
        qx = pl.pallas_call(
            _quantize_kernel,
            out_shape=jax.ShapeDtypeStruct((B_pad, self.K_pad), jnp.float8_e4m3fn),
            grid_spec=pltpu.PrefetchScalarGridSpec(
                num_scalar_prefetch=0,
                grid=(B_pad // tm, self.K_pad // tk),
                in_specs=[
                    pl.BlockSpec(memory_space=pltpu.MemorySpace.SMEM),   # q_scale (1,)
                    pl.BlockSpec((tm, tk), lambda i, j: (i, j)),         # x f32 tile
                ],
                out_specs=pl.BlockSpec((tm, tk), lambda i, j: (i, j)),   # qx fp8 tile
            ),
            compiler_params=pltpu.CompilerParams(
                dimension_semantics=("parallel", "parallel")),
        )(q_scale.reshape(1), x_p)

        # ---- GEMM: fp8 operands, f32 accumulation, fused scale+bias epilogue ----
        itemsize = jnp.dtype(out_dtype).itemsize
        vmem_est = (2 * tm * tk            # qx fp8, double-buffered
                    + 2 * tk * tn          # weight fp8, double-buffered
                    + 2 * tm * tn * itemsize
                    + tm * tn * 4          # f32 accumulator
                    + 4 * tn * 4)
        vmem_limit = int(min(48 << 20, max(2 * vmem_est, 16 << 20)))

        kernel = functools.partial(_fp8_matmul_kernel, native_fp8=self.native_fp8)
        out = pl.pallas_call(
            kernel,
            out_shape=jax.ShapeDtypeStruct((B_pad, self.N_pad), out_dtype),
            grid_spec=pltpu.PrefetchScalarGridSpec(
                num_scalar_prefetch=0,
                grid=(B_pad // tm, self.N_pad // tn, self.K_pad // tk),
                in_specs=[
                    pl.BlockSpec(memory_space=pltpu.MemorySpace.SMEM),   # out_scale (1,)
                    pl.BlockSpec((tm, tk), lambda i, j, k: (i, k)),      # qx fp8 tile
                    pl.BlockSpec((tk, tn), lambda i, j, k: (k, j)),      # fp8 weight [K,N]
                    pl.BlockSpec((1, tn), lambda i, j, k: (0, j)),       # bias tile
                ],
                out_specs=pl.BlockSpec((tm, tn), lambda i, j, k: (i, j)),
                scratch_shapes=[pltpu.VMEM((tm, tn), jnp.float32)],
            ),
            compiler_params=pltpu.CompilerParams(
                dimension_semantics=("parallel", "parallel", "arbitrary"),
                vmem_limit_bytes=vmem_limit),
        )(out_scale.reshape(1), qx, self.w_kn, self.b_p)

        return out[:B, :self.N]


def reference(x, qweight, w_scale, bias):
    """Pure-JAX emulation of the PyTorch forward (fallback fp8_gemm path)."""
    amax = jnp.maximum(jnp.max(jnp.abs(x)), 1e-12)
    q_scale = FP8_MAX / amax
    x_scale = 1.0 / q_scale
    qx = jnp.clip(x * q_scale, FP8_MIN, FP8_MAX).astype(jnp.float8_e4m3fn)
    a = qx.astype(jnp.float32) * x_scale
    w = qweight.astype(jnp.float32) * w_scale
    return a @ w.T + bias[None, :]


if __name__ == "__main__":
    key = jax.random.PRNGKey(0)
    kx, kw, kb = jax.random.split(key, 3)

    # batch=16, in_features=384, out_features=256 -- small, but exercises a real
    # (1, 2, 3) GEMM grid with multi-step K accumulation and multi-tile N.
    B, K, N = 16, 384, 256
    x = jax.random.normal(kx, (B, K), dtype=jnp.float32)
    w_fp32 = jax.random.normal(kw, (N, K), dtype=jnp.float32)
    bias = jax.random.normal(kb, (N,), dtype=jnp.float32)

    # __init__ receives an already-quantized weight + scale (as in the torch module).
    qweight, w_scale = per_tensor_quantize(w_fp32)

    # Small tiles here so the toy shapes still produce a multi-tile grid; production
    # shapes use the large defaults (tm=256, tn=1024, tk=2048).
    mod = FP8DynamicLinearTPU(qweight, w_scale, bias, tm=128, tn=128, tk=128)
    out = mod(x)
    out = jax.block_until_ready(out)

    ref = reference(x, qweight, w_scale, bias)
    assert out.shape == (B, N) and out.dtype == x.dtype
    assert jnp.allclose(out, ref, rtol=5e-2, atol=5e-2), "mismatch vs reference"

    print("KERNEL_OK")
</pallas_src>

<mosaic_0001>
module attributes {stable_mosaic.version = 11 : i64} {
  func.func @_quantize_kernel(%arg0: i32, %arg1: i32, %arg2: memref<1xf32, #tpu.memory_space<smem>>, %arg3: memref<32x128xf32, #tpu.memory_space<vmem>>, %arg4: memref<32x128xf8E4M3FN, #tpu.memory_space<vmem>>) attributes {dimension_semantics = [#tpu.dimension_semantics<parallel>, #tpu.dimension_semantics<parallel>], iteration_bounds = array<i64: 1, 3>, scalar_prefetch = 0 : i64, scratch_operands = 0 : i64, tpu.core_type = #tpu.core_type<tc>, window_params = [{transform_indices = @transform_0, window_bounds = array<i64: 1>}, {transform_indices = @transform_1, window_bounds = array<i64: 32, 128>}, {transform_indices = @transform_2, window_bounds = array<i64: 32, 128>}]} {
    %c0 = arith.constant 0 : index
    %0 = memref.load %arg2[%c0] : memref<1xf32, #tpu.memory_space<smem>>
    %c0_0 = arith.constant 0 : index
    %c0_1 = arith.constant 0 : index
    %1 = vector.load %arg3[%c0_0, %c0_1] : memref<32x128xf32, #tpu.memory_space<vmem>>, vector<32x128xf32>
    %2 = vector.broadcast %0 : f32 to vector<32x128xf32>
    %3 = arith.mulf %1, %2 : vector<32x128xf32>
    %cst = arith.constant -4.480000e+02 : f32
    %cst_2 = arith.constant 4.480000e+02 : f32
    %4 = vector.broadcast %cst : f32 to vector<32x128xf32>
    %5 = arith.maximumf %4, %3 : vector<32x128xf32>
    %6 = vector.broadcast %cst_2 : f32 to vector<32x128xf32>
    %7 = arith.minimumf %6, %5 : vector<32x128xf32>
    %8 = arith.truncf %7 : vector<32x128xf32> to vector<32x128xf8E4M3FN>
    %c0_3 = arith.constant 0 : index
    %c0_4 = arith.constant 0 : index
    %9 = vector.load %arg4[%c0_3, %c0_4] : memref<32x128xf8E4M3FN, #tpu.memory_space<vmem>>, vector<32x128xf8E4M3FN>
    tpu.vector_store %arg4[%c0_3, %c0_4], %8 {strides = array<i32>} : memref<32x128xf8E4M3FN, #tpu.memory_space<vmem>>, vector<32x128xf8E4M3FN>,
    return
  }
  func.func @transform_0(%arg0: i32, %arg1: i32) -> i32 {
    %c0_i32 = arith.constant 0 : i32
    %c0_i32_0 = arith.constant 0 : i32
    return %c0_i32 : i32
  }
  func.func @transform_1(%arg0: i32, %arg1: i32) -> (i32, i32) {
    %c0_i32 = arith.constant 0 : i32
    return %arg0, %arg1 : i32, i32
  }
  func.func @transform_2(%arg0: i32, %arg1: i32) -> (i32, i32) {
    %c0_i32 = arith.constant 0 : i32
    return %arg0, %arg1 : i32, i32
  }
}

</mosaic_0001>

<bundles_post_ra>
// kernel: tpu_custom_call.1
= control target key start
LH: loop header
LB: loop body
LE: loop exit
PB: predicated region body
PF: predicated region fallthrough
CT: control target
= control target key end

     0   :  { %s744_s0 = inlined_call_operand.<no memory space> [shape: f32[1], index: 0, kind: input, shape index: {}]   ;;  %s745_s1 = inlined_call_operand.hbm [shape: f32[32,384], index: 1, kind: input, shape index: {}]   ;;  %s746_s2 = inlined_call_operand.hbm [shape: f8e4m3fn[32,384], index: 2, kind: output, shape index: {}]  }
   0x1   :  { %7 = sst [smem:[#allocation2]] %s744_s0 }
   0x2   :  { %8 = vsyncpa [#allocation4], 0 }
   0x3   :  { %10 = vsyncpa [#allocation4 + $0x1], 0 }
   0x4   :  { %11 = vsyncpa [#allocation5], 0 }
   0x5   :  { %13 = vsyncpa [#allocation5 + $0x1], 0  ;;  %s606_s11 = smov 0   ;;  %s608_s12 = smov 0  }
   0x6   :  { %s610_s13 = smov 0   ;;  %s612_s14 = smov 0  }
   0x7   :  { %s614_s15 = smov 0   ;;  %s616_s16 = smov 0  }
   0x8 LB: > { %s387_s0 = sadd.s32 4294967295, %s581_s16   ;;  %s388_s17 = sadd.s32 4294967294, %s581_s16   ;;  %s581_s16 = sphi %s616_s16, %s19_s16   ;;  %s577_s15 = sphi %s614_s15, %s756_s15   ;;  %s573_s14 = sphi %s612_s14, %s755_s14   ;;  %s569_s13 = sphi %s610_s13, %s754_s13   ;;  %s565_s12 = sphi %s608_s12, %s753_s12   ;;  %s561_s11 = sphi %s606_s11, %s752_s11  }
   0x9   : > { %s28_s18 = sadd.s32 1, %s577_s15  ;;  %s61_s19 = sadd.s32 1, %s569_s13 }
   0xa   : > { %p29_p0 = scmp.ge.s32.totalorder %s28_s18, 3  ;;  %p68_p1 = scmp.ne.s32.totalorder %s569_s13, %s565_s12 }
   0xb   : > { %p69_p2 = scmp.eq.s32.totalorder %s581_s16, 0  ;;  %p74_p3 = scmp.ne.s32.totalorder %s565_s12, %s561_s11 }
   0xc   : > { %s758_s18 = smov (%p29_p0, %s28_s18), 0  ;;  %p75_p5 = scmp.eq.s32.totalorder %s387_s0, 0 }
   0xd   : > { %p647_p4 = por %p69_p2, %p68_p1  ;;  %s57_s21 = ssub.s32 %s577_s15, %s758_s18 }
   0xe   : > { %p100_p6 = scmp.eq.s32.totalorder %s387_s0, 2  ;;  %p59_p7 = scmp.eq.s32.totalorder %s57_s21, 0 }
   0xf   : > { %p653_p8 = por %p75_p5, %p74_p3  ;;  %p106_p10 = scmp.eq.s32.totalorder %s388_s17, 2 }
  0x10   : > { %p657_p9 = por %p100_p6, %p68_p1  ;;  %p420_p12 = scmp.lt.s32.totalorder %s581_s16, 3 }
  0x11   : > { %s662_s24 = scalar_select %p59_p7, %s569_s13, %s61_s19  }
  0x12   : > { %p664_p11 = por %p106_p10, %p74_p3  ;;  %s129_s26 = sand.u32 1, %s569_s13  }
  0x13   : > { %s391_s27 = sshll.u32 %s129_s26, 5  ;;  %s392_s28 = sshll.u32 %s577_s15, 7 }
  0x14   : > { %s141_s3 = scalar_lea.hbm %s745_s1, %s392_s28  ;;  %s133_s4 = scalar_lea.vmem [#allocation3], %s391_s27 }
  0x15   : > { %s142_s5 = sshll.u32 %s133_s4, 4  ;;  %p676_p13 = pnand %p420_p12, %p647_p4  ;;  %s143_s5 = int_to_ptr.vmem [resolvable:$true] %s142_s5 }
  0x16   : > { %s130_s7 = scalar_lea.sflag [#allocation4], %s129_s26  ;;  %s486_s8 = scalar_lea.vmem %s143_s5, 512 }
  0x17   : > { %p475_p0 = pneg %p676_p13  ;;  %p487_p1 = scmp.ne.s32.totalorder %s143_s5, %s486_s8 }
  0x18   : > { %s583_s9 = smov [#allocation3]  }
  0x19   : > { %p489_p2 = pnand %p487_p1, %p475_p0  ;;  %s491_s10 = sshll.u32 %s583_s9, 4  ;;  %s492_s10 = int_to_ptr.vmem [resolvable:$false] %s491_s10 }
  0x1a   : > { %s493_s0 = scalar_lea.vmem %s492_s10, 1024  ;;  %p494_p5 = scmp.lt.s32.totalorder %s143_s5, %s492_s10 }
  0x1b   : > { %p490_p3 = pneg %p489_p2  ;;  %p495_p6 = scmp.lt.s32.totalorder %s493_s0, %s486_s8 }
  0x1d   : > { %p496_p7 = por %p495_p6, %p494_p5 }
  0x1f   : > { %p497_p10 = pnand %p496_p7, %p490_p3 }
  0x21   : > { %500 = shalt.err (!%p497_p10)
}
  0x22   : > { %s584_s17 = smov 384   ;;  %s585_s19 = smov 128  }
  0x23   : > { %s586_s20 = smov 8   ;;  %p393_p4 = scmp.ge.s32.totalorder %s581_s16, 1 }
  0x24   : > { %415 = dma.hbm_to_vmem [thread:$0]  (!%p676_p13), %s141_s3, 512, %s143_s5, %s130_s7, %s584_s17, %s585_s19, %s586_s20  }
  0x25   : > { %p150_p12 = scmp.lt.s32.totalorder %s581_s16, 4 }
  0x27   : > { %p151_p0 = pnand %p393_p4, %p150_p12 }
  0x28   : > { %s687_s21 = sand.u32 (!%p151_p0), 1, %s565_s12  }
  0x29   : > { %154 = sbr.rel (%p151_p0) target bundleno = 100 (0x64), region = 28  ;;  %s394_s26 = sshll.u32 (!%p151_p0), %s687_s21, 5 }
  0x2a   : > { %s157_s27 = scalar_lea.sflag (!%p151_p0), [#allocation4], %s687_s21  ;;  %s160_s28 = scalar_lea.vmem (!%p151_p0), [#allocation3], %s394_s26 }
  0x2e   : > { %552 = dma.done.wait (%p653_p8), %s157_s27, 512  }
  0x2f   : > { %554 = vsyncadd (%p653_p8), %s157_s27, 4294966784  ;;  %s182_s29 = sld [smem:[#allocation2]]  ;;  %v183_v0 = vld [vmem:[%s160_s28] sm:$0xff]  ;;  %v184_v1 = vld [vmem:[%s160_s28 + $0x8] sm:$0xff]  ;;  %s395_s22 = sshll.u32 %s687_s21, 3 }
  0x30   : > { %v185_v2 = vld [vmem:[%s160_s28 + $0x10] sm:$0xff]  ;;  %v186_v4 = vld [vmem:[%s160_s28 + $0x18] sm:$0xff]  ;;  %s180_s30 = scalar_lea.vmem [#allocation6], %s395_s22  ;;  %s405_s4 = sshll.u32 %s573_s14, 7 }
  0x31   : > { %s305_s3 = sshll.u32 %s180_s30, 4  ;;  %s303_s7 = scalar_lea.hbm %s746_s2, %s405_s4  ;;  %s306_s3 = int_to_ptr.vmem [resolvable:$true] %s305_s3 }
  0x32   : > { %s290_s8 = scalar_lea.sflag [#allocation5], %s687_s21  ;;  %s501_s9 = scalar_lea.vmem %s306_s3, 128 }
  0x33   : > { %p502_p8 = scmp.ne.s32.totalorder %s306_s3, %s501_s9  ;;  %s587_s10 = smov [#allocation6]  }
  0x34   : > { %s505_s0 = sshll.u32 %s587_s10, 4  ;;  %s506_s0 = int_to_ptr.vmem [resolvable:$false] %s505_s0 }
  0x35   : > { %v187_v3 = vstv %s182_s29  ;;  %p503_p13 = pnand %p502_p8, %p657_p9  ;;  %s507_s17 = scalar_lea.vmem %s506_s0, 256 }
  0x36   : > { %v188_v5 = vmul.f32 %v187_v3, %v183_v0  ;;  %v189_v6 = vmul.f32 %v187_v3, %v184_v1  ;;  %v190_v7 = vmul.f32 %v187_v3, %v185_v2  ;;  %v191_v10 = vmul.f32 %v187_v3, %v186_v4  ;;  %p508_p2 = scmp.lt.s32.totalorder %s306_s3, %s506_s0  ;;  %p509_p3 = scmp.lt.s32.totalorder %s507_s17, %s501_s9 }
  0x37   : > { %p504_p1 = pneg %p503_p13 }
  0x38   : > { %v396_v8 = vclamps-f32 %v188_v5, 448.0  ;;  %v397_v9 = vclamps-f32 %v189_v6, 448.0  ;;  %v398_v13 = vclamps-f32 %v190_v7, 448.0  ;;  %v695_v19 = vclamps-f32 %v191_v10, 448.0  ;;  %p510_p5 = por %p509_p3, %p508_p2 }
  0x3a   : > { %v200_v11 = vand.u32 2147483647, %v396_v8  ;;  %v206_v12 = vshrl.u32 %v396_v8, 20  ;;  %v221_v14 = vand.u32 2147483647, %v397_v9  ;;  %v227_v15 = vshrl.u32 %v397_v9, 20  ;;  %p511_p6 = pnand %p510_p5, %p504_p1 }
  0x3b   : > { %v201_v22 = vand.u32 2147483648, %v396_v8  ;;  %vm215_vm1 = vcmp.ne.f32.partialorder %v396_v8, %v396_v8  ;;  %v222_v26 = vand.u32 2147483648, %v397_v9  ;;  %v242_v27 = vand.u32 2147483647, %v398_v13 }
  0x3c   : > { %v203_v16 = vadd.f32 1182793728, %v200_v11  ;;  %v207_v17 = vand.u32 1, %v206_v12  ;;  %v208_v18 = vadd.s32 3288858623, %v200_v11  ;;  %v224_v20 = vadd.f32 1182793728, %v221_v14 }
  0x3d   : > { %v228_v21 = vand.u32 1, %v227_v15  ;;  %v229_v25 = vadd.s32 3288858623, %v221_v14  ;;  %vm211_vm0 = vcmp.lt.s32.totalorder %v200_v11, 1015021568  ;;  %v248_v31 = vshrl.u32 %v398_v13, 20 }
  0x3e   : > { %v400_v23 = vadd.s32 3112173568, %v203_v16  ;;  %v209_v24 = vadd.s32 %v208_v18, %v207_v17  ;;  %v401_v29 = vadd.s32 3112173568, %v224_v20  ;;  %vm213_vm2 = vcmp.ge.s32.totalorder %v200_v11, 1139277825 }
  0x3f   : > { %v230_v30 = vadd.s32 %v229_v25, %v228_v21  ;;  %vm232_vm3 = vcmp.lt.s32.totalorder %v221_v14, 1015021568  ;;  %v245_v32 = vadd.f32 1182793728, %v242_v27  ;;  %v250_v33 = vadd.s32 3288858623, %v242_v27 }
  0x40   : > { %v210_v28 = vshrl.u32 %v209_v24, 20  ;;  %vm234_vm4 = vcmp.ge.s32.totalorder %v221_v14, 1139277825  ;;  %v249_v36 = vand.u32 1, %v248_v31  ;;  %v217_v37 = vshrl.u32 %v201_v22, 24 }
  0x41   : > { %v231_v35 = vshrl.u32 %v230_v30, 20  ;;  %vm236_vm5 = vcmp.ne.f32.partialorder %v397_v9, %v397_v9  ;;  %v243_v38 = vand.u32 2147483648, %v398_v13  ;;  %v263_v39 = vand.u32 2147483647, %v695_v19 }
  0x42   : > { %v212_v34 = vsel %vm211_vm0, %v400_v23, %v210_v28  ;;  %v402_v42 = vadd.s32 3112173568, %v245_v32  ;;  %v251_v43 = vadd.s32 %v250_v33, %v249_v36  ;;  %vm253_vm6 = vcmp.lt.s32.totalorder %v242_v27, 1015021568 }
  0x43   : > { %v214_v40 = vsel %vm213_vm2, 127, %v212_v34  ;;  %v233_v41 = vsel %vm232_vm3, %v401_v29, %v231_v35  ;;  %v266_v45 = vadd.f32 1182793728, %v263_v39  ;;  %v269_v46 = vshrl.u32 %v695_v19, 20 }
  0x44   : > { %v235_v44 = vsel %vm234_vm4, 127, %v233_v41  ;;  %v238_v47 = vshrl.u32 %v222_v26, 24  ;;  %v252_v48 = vshrl.u32 %v251_v43, 20  ;;  %vm255_vm7 = vcmp.ge.s32.totalorder %v242_v27, 1139277825 }
  0x45   : > { %v271_v49 = vadd.s32 3288858623, %v263_v39  ;;  %v216_v50 = vsel %vm215_vm1, 127, %v214_v40  ;;  %v237_v51 = vsel %vm236_vm5, 127, %v235_v44  ;;  %vm257_vm8 = vcmp.ne.f32.partialorder %v398_v13, %v398_v13 }
  0x46   : > { %v270_v52 = vand.u32 1, %v269_v46  ;;  %v254_v53 = vsel %vm253_vm6, %v402_v42, %v252_v48  ;;  %v259_v54 = vshrl.u32 %v243_v38, 24  ;;  %v264_v55 = vand.u32 2147483648, %v695_v19 }
  0x47   : > { %v256_v56 = vsel %vm255_vm7, 127, %v254_v53  ;;  %v403_v57 = vadd.s32 3112173568, %v266_v45  ;;  %v218_v59 = vor.u32 %v217_v37, %v216_v50  ;;  %v239_v60 = vor.u32 %v238_v47, %v237_v51 }
  0x48   : > { %v272_v58 = vadd.s32 %v271_v49, %v270_v52  ;;  %v258_v61 = vsel %vm257_vm8, 127, %v256_v56  ;;  %vm274_vm9 = vcmp.lt.s32.totalorder %v263_v39, 1015021568  ;;  %vm276_vm10 = vcmp.ge.s32.totalorder %v263_v39, 1139277825 }
  0x49   : > { %v260_v63 = vor.u32 %v259_v54, %v258_v61  ;;  %vm278_vm11 = vcmp.ne.f32.partialorder %v695_v19, %v695_v19  ;;  %v280_v0 = vshrl.u32 %v264_v55, 24  ;;  %v219_v2 = vor.u32 4294967040, %v218_v59 }
  0x4a   : > { %v273_v62 = vshrl.u32 %v272_v58, 20  ;;  %v240_v3 = vor.u32 4294967040, %v239_v60 }
  0x4b   : > { %v261_v6 = vor.u32 4294967040, %v260_v63 }
  0x4c   : > { %v275_v1 = vsel %vm274_vm9, %v403_v57, %v273_v62  ;;  %v284_v9 = vpack.c.b16 %v240_v3, %v219_v2 }
  0x4d   : > { %v277_v4 = vsel %vm276_vm10, 127, %v275_v1 }
  0x4e   : > { %v279_v5 = vsel %vm278_vm11, 127, %v277_v4 }
  0x4f   : > { %v281_v7 = vor.u32 %v280_v0, %v279_v5 }
  0x51   : > { %v282_v8 = vor.u32 4294967040, %v281_v7 }
  0x53   : > { %v285_v10 = vpack.c.b16 %v282_v8, %v261_v6 }
  0x55   : > { %v286_v11 = vpack.c.b8 %v285_v10, %v284_v9 }
  0x57   : > { %288 = vst [vmem:[%s180_s30] sm:$0xff] %v286_v11 }
  0x58   : > { %514 = shalt.err (!%p511_p6)
}
  0x59   : > { %s515_s14 = scalar_lea.hbm %s303_s7, 128  ;;  %s519_s21 = scalar_lea.hbm %s746_s2, 384 }
  0x5a   : > { %p516_p7 = scmp.ne.s32.totalorder %s303_s7, %s515_s14  ;;  %p520_p12 = scmp.lt.s32.totalorder %s303_s7, %s746_s2 }
  0x5b   : > { %p521_p0 = scmp.lt.s32.totalorder %s519_s21, %s515_s14 }
  0x5c   : > { %p517_p10 = pnand %p516_p7, %p657_p9 }
  0x5d   : > { %p522_p8 = por %p521_p0, %p520_p12 }
  0x5e   : > { %p518_p4 = pneg %p517_p10 }
  0x60   : > { %p523_p13 = pnand %p522_p8, %p518_p4 }
  0x62   : > { %526 = shalt.err (!%p523_p13)
}
  0x63   : > { %410 = dma.vmem_to_hbm [thread:$0]  (%p657_p9), %s306_s3, 128, %s303_s7, %s290_s8  }
  0x64 PF: > { %p421_p1 = scmp.ge.s32.totalorder %s581_s16, 2  ;;  %s317_s28 = sand.u32 1, %s561_s11  }
  0x65   : > { %s318_s29 = scalar_lea.sflag [#allocation5], %s317_s28 }
  0x66   : > { %p417_p2 = pnand %p421_p1, %p664_p11 }
  0x68   : > { %p418_p3 = pneg %p417_p2 }
  0x6a   : > { %556 = dma.done.wait (%p418_p3), %s318_s29, 128  }
  0x6b   : > { %558 = vsyncadd (%p418_p3), %s318_s29, 4294967168  ;;  %s19_s16 = sadd.s32 1, %s581_s16   ;;  %s752_s11 = smov %s565_s12 }
  0x6c   : > { %p16_p5 = scmp.ge.s32.totalorder %s19_s16, 5   ;;  %s753_s12 = smov %s569_s13 }
  0x6d   : > { %s754_s13 = smov %s662_s24  ;;  %s755_s14 = smov %s577_s15 }
  0x6e   : > { %s756_s15 = smov %s758_s18  ;;  %18 = sbr.rel (!%p16_p5) target bundleno = 8 (0x8), region = 73 }
  0x73   :  { %323 = vsyncpa [#allocation4], 1 }
  0x74   :  { %325 = vsyncpa [#allocation4 + $0x1], 1 }
  0x75   :  { %326 = vsyncpa [#allocation5], 1 }
  0x76   :  { %328 = vsyncpa [#allocation5 + $0x1], 1 }

</bundles_post_ra>
